<compile_context>
chip_gen: v6e
topology: v6e:2x2x1
jax: 0.10.0
libtpu: 0.0.40
codegen_flags: <defaults>
</compile_context>

<pallas_src>
import functools

import jax
import jax.numpy as jnp
from jax.experimental import pallas as pl
from jax.experimental.pallas import tpu as pltpu

BN_EPS = 1e-5


# --------------------------------------------------------------------------------------
# Kernel 1: tiled segment-sum pooling (per-core partial sums + counts).
# --------------------------------------------------------------------------------------
def _pool_kernel(ids_ref, ns_ref, sum_ref, cnt_ref, acc_ref, cacc_ref, *, chunk):
    # ids_ref : [1, TN]  int32 graph id per node (-1 for padding)
    # ns_ref  : [TN, H]  node states tile (native dtype, e.g. f32)
    # sum_ref : [G, H]   f32 per-core partial sums (leading core axis squeezed)
    # cnt_ref : [G, 1]   f32 per-core partial counts
    # acc_ref : [G, H]   f32 VMEM scratch accumulator
    # cacc_ref: [G, 1]   f32 VMEM scratch count accumulator
    t = pl.program_id(1)

    @pl.when(t == 0)
    def _init():
        acc_ref[...] = jnp.zeros_like(acc_ref)
        cacc_ref[...] = jnp.zeros_like(cacc_ref)

    num_graphs = acc_ref.shape[0]
    tile_n = ids_ref.shape[1]
    n_chunks = tile_n // chunk

    # Column iota, broadcast against the (1, chunk) ids — no (G, TN) iota temporary.
    g_iota = jax.lax.broadcasted_iota(jnp.int32, (num_graphs, 1), 0)

    # Sub-chunk the tile: keeps the (G, chunk) one-hot small regardless of node_tile.
    for c in range(n_chunks):
        ids = ids_ref[:, c * chunk:(c + 1) * chunk]                     # [1, chunk]
        ns = ns_ref[c * chunk:(c + 1) * chunk, :]                       # [chunk, H]
        hit = (g_iota == ids)                                           # [G, chunk] bool
        hit_f32 = hit.astype(jnp.float32)
        onehot = hit_f32 if ns_ref.dtype == jnp.float32 else hit.astype(ns_ref.dtype)
        acc_ref[...] += jnp.dot(onehot, ns,
                                preferred_element_type=jnp.float32)     # MXU, f32 acc
        # Counts: lane reduce of the one-hot (XLU slot — effectively free here).
        cacc_ref[...] += jnp.sum(hit_f32, axis=-1, keepdims=True)

    @pl.when(t == pl.num_programs(1) - 1)
    def _store():
        sum_ref[...] = acc_ref[...]
        cnt_ref[...] = cacc_ref[...]


# --------------------------------------------------------------------------------------
# Kernel 2: combine partials + segment-mean + BatchNorm(eval) + MLP head.  Tiny.
# --------------------------------------------------------------------------------------
def _finalize_kernel(sum_ref, cnt_ref, aux_ref,
                     gamma_h, beta_h, mean_h, var_h,
                     gamma_a, beta_a, mean_a, var_a,
                     w1h_ref, w1a_ref, b1_ref, w2_ref, b2_ref,
                     out_ref):
    sums = jnp.sum(sum_ref[...], axis=0)                                # [G, H] f32
    counts = jnp.sum(cnt_ref[...], axis=0)                              # [G, 1] f32
    # Empty graphs (count==0) get mean 0.
    pooled = sums / jnp.maximum(counts, 1.0)

    # BatchNorm1d (eval: running stats), applied split-wise to the pooled part and the
    # aux part of the (virtually) concatenated feature vector.
    xh = (pooled - mean_h[...]) * jax.lax.rsqrt(var_h[...] + BN_EPS)
    xh = xh * gamma_h[...] + beta_h[...]                                # [G, H]
    xa = (aux_ref[...] - mean_a[...]) * jax.lax.rsqrt(var_a[...] + BN_EPS)
    xa = xa * gamma_a[...] + beta_a[...]                                # [G, A]

    # feed_forward: Linear(H+A -> L) + ReLU + Dropout(identity, eval) + Linear(L -> C)
    # concat(xh, xa) @ W1 == xh @ W1[:H] + xa @ W1[H:]
    h = (jnp.dot(xh, w1h_ref[...], preferred_element_type=jnp.float32)
         + jnp.dot(xa, w1a_ref[...], preferred_element_type=jnp.float32)
         + b1_ref[...])                                                 # [G, L]
    h = jnp.maximum(h, 0.0)
    out_ref[...] = (jnp.dot(h, w2_ref[...], preferred_element_type=jnp.float32)
                    + b2_ref[...])                                      # [G, C]


# --------------------------------------------------------------------------------------
# Wrapper.
# --------------------------------------------------------------------------------------
def _default_num_core_splits():
    """2 on v7x (two TensorCores per chip), 1 otherwise."""
    try:
        kind = jax.devices()[0].device_kind.lower()
    except Exception:  # pragma: no cover
        return 1
    return 2 if "v7" in kind else 1


def readout_forward(node_states, batch_nodes, aux_variables, params, num_classes,
                    discretize_problem=True, *,
                    node_tile=4096, node_chunk=512, num_core_splits=None,
                    vmem_limit_bytes=32 * 1024 * 1024):
    """Forward pass of the Readout head (eval mode).

    node_states   : [N, H] float32 (streamed in native dtype — no cast prepass)
    batch_nodes   : [N]    int32 (graph id per node)
    aux_variables : [G, A] float32
    returns       : [G, num_classes] (classification) or [G] (regression)
    """
    assert node_chunk % 128 == 0, "node_chunk must be a multiple of 128 (lane width)"
    assert node_tile % node_chunk == 0, "node_tile must be a multiple of node_chunk"
    N, H = node_states.shape
    G, _ = aux_variables.shape
    out_dim = params["w2"].shape[1]

    S = _default_num_core_splits() if num_core_splits is None else num_core_splits

    # Pad the node axis so it splits evenly across cores and tiles.  Only pads when
    # needed; ids are tiny, node_states are only copied if N does not already divide.
    tiles_per_split = max(1, pl.cdiv(N, S * node_tile))
    n_pad = S * tiles_per_split * node_tile
    if n_pad > N:
        ns = jnp.pad(node_states, ((0, n_pad - N), (0, 0)))
    else:
        ns = node_states
    ids = jnp.full((1, n_pad), -1, jnp.int32).at[0, :N].set(batch_nodes.astype(jnp.int32))

    itemsize = jnp.dtype(ns.dtype).itemsize
    pool_kernel = functools.partial(_pool_kernel, chunk=node_chunk)
    sums_partial, counts_partial = pl.pallas_call(
        pool_kernel,
        out_shape=(jax.ShapeDtypeStruct((S, G, H), jnp.float32),
                   jax.ShapeDtypeStruct((S, G, 1), jnp.float32)),
        grid=(S, tiles_per_split),
        in_specs=[
            pl.BlockSpec((1, node_tile),
                         lambda s, t: (0, s * tiles_per_split + t)),
            pl.BlockSpec((node_tile, H),
                         lambda s, t: (s * tiles_per_split + t, 0)),
        ],
        out_specs=(pl.BlockSpec((None, G, H), lambda s, t: (s, 0, 0)),
                   pl.BlockSpec((None, G, 1), lambda s, t: (s, 0, 0))),
        scratch_shapes=[pltpu.VMEM((G, H), jnp.float32),
                        pltpu.VMEM((G, 1), jnp.float32)],
        compiler_params=pltpu.CompilerParams(
            dimension_semantics=("parallel", "arbitrary"),
            vmem_limit_bytes=vmem_limit_bytes),
        cost_estimate=pl.CostEstimate(
            flops=2 * G * n_pad * H,
            transcendentals=0,
            bytes_accessed=(n_pad * H * itemsize + n_pad * 4
                            + S * G * (H + 1) * 4)),
    )(ids, ns)

    vmem = pl.BlockSpec(memory_space=pltpu.MemorySpace.VMEM)
    finalize_inputs = (
        sums_partial, counts_partial, aux_variables.astype(jnp.float32),
        params["gamma_h"], params["beta_h"], params["mean_h"], params["var_h"],
        params["gamma_a"], params["beta_a"], params["mean_a"], params["var_a"],
        params["w1h"], params["w1a"], params["b1"],
        params["w2"], params["b2"],
    )
    out = pl.pallas_call(
        _finalize_kernel,
        out_shape=jax.ShapeDtypeStruct((G, out_dim), jnp.float32),
        in_specs=[vmem] * len(finalize_inputs),
        out_specs=vmem,
        compiler_params=pltpu.CompilerParams(vmem_limit_bytes=16 * 1024 * 1024),
    )(*finalize_inputs)

    if not discretize_problem:
        out = out.reshape(-1)   # torch.flatten for the regression head
    return out


def make_params(key, hidden_size, aux_dim, layer_size, num_classes):
    """Deterministic parameter init mimicking nn.Linear / nn.BatchNorm1d defaults."""
    D = hidden_size + aux_dim
    k1, k2, k3, k4 = jax.random.split(key, 4)

    bound1 = 1.0 / jnp.sqrt(D)
    w1 = jax.random.uniform(k1, (D, layer_size), jnp.float32, -bound1, bound1)
    b1 = jax.random.uniform(k2, (1, layer_size), jnp.float32, -bound1, bound1)

    bound2 = 1.0 / jnp.sqrt(layer_size)
    w2 = jax.random.uniform(k3, (layer_size, num_classes), jnp.float32, -bound2, bound2)
    b2 = jax.random.uniform(k4, (1, num_classes), jnp.float32, -bound2, bound2)

    # BatchNorm1d defaults: weight=1, bias=0, running_mean=0, running_var=1
    gamma = jnp.ones((1, D), jnp.float32)
    beta = jnp.zeros((1, D), jnp.float32)
    running_mean = jnp.zeros((1, D), jnp.float32)
    running_var = jnp.ones((1, D), jnp.float32)

    Hh = hidden_size
    return {
        "w1h": w1[:Hh, :], "w1a": w1[Hh:, :], "b1": b1,
        "w2": w2, "b2": b2,
        "gamma_h": gamma[:, :Hh], "gamma_a": gamma[:, Hh:],
        "beta_h": beta[:, :Hh], "beta_a": beta[:, Hh:],
        "mean_h": running_mean[:, :Hh], "mean_a": running_mean[:, Hh:],
        "var_h": running_var[:, :Hh], "var_a": running_var[:, Hh:],
    }


if __name__ == "__main__":
    # Small, deterministic example shapes.
    num_nodes = 64
    hidden_size = 32
    aux_features_dim = 8
    graph_x_layer_size = 32
    num_classes = 4
    num_graphs = 4
    discretize_problem = True  # classification head: output dim = num_classes

    key = jax.random.PRNGKey(0)
    k_ns, k_aux, k_par = jax.random.split(key, 3)

    node_states = jax.random.normal(k_ns, (num_nodes, hidden_size), jnp.float32)
    # each graph owns a contiguous block of 16 nodes
    batch_nodes = jnp.repeat(jnp.arange(num_graphs, dtype=jnp.int32),
                             num_nodes // num_graphs)
    aux_variables = jax.random.normal(k_aux, (num_graphs, aux_features_dim), jnp.float32)

    params = make_params(k_par, hidden_size, aux_features_dim,
                         graph_x_layer_size, num_classes)

    # Small tile/chunk for the toy test; defaults (4096/512) are for real workloads.
    logits = readout_forward(node_states, batch_nodes, aux_variables, params,
                             num_classes, discretize_problem,
                             node_tile=256, node_chunk=128)
    logits = jax.block_until_ready(logits)

    # Pure-JAX f32 reference (eval-mode semantics); the kernel now pools in f32.
    onehot = (batch_nodes[None, :] == jnp.arange(num_graphs)[:, None]).astype(jnp.float32)
    pooled = (onehot @ node_states) / jnp.maximum(onehot.sum(1, keepdims=True), 1.0)
    x = jnp.concatenate([pooled, aux_variables], axis=1)
    gamma = jnp.concatenate([params["gamma_h"], params["gamma_a"]], axis=1)
    beta = jnp.concatenate([params["beta_h"], params["beta_a"]], axis=1)
    mean = jnp.concatenate([params["mean_h"], params["mean_a"]], axis=1)
    var = jnp.concatenate([params["var_h"], params["var_a"]], axis=1)
    xn = (x - mean) / jnp.sqrt(var + BN_EPS) * gamma + beta
    w1 = jnp.concatenate([params["w1h"], params["w1a"]], axis=0)
    ref = jnp.maximum(xn @ w1 + params["b1"], 0.0) @ params["w2"] + params["b2"]

    assert logits.shape == (num_graphs, num_classes)
    assert jnp.allclose(logits, ref, atol=2e-3, rtol=2e-3), "mismatch vs reference"

    print("KERNEL_OK")
</pallas_src>

<mosaic_0001>
module attributes {stable_mosaic.version = 11 : i64} {
  func.func @_pool_kernel(%arg0: i32, %arg1: i32, %arg2: memref<1x256xi32, #tpu.memory_space<vmem>>, %arg3: memref<256x32xf32, #tpu.memory_space<vmem>>, %arg4: memref<1x4x32xf32, #tpu.memory_space<vmem>>, %arg5: memref<1x4x1xf32, #tpu.memory_space<vmem>>, %arg6: memref<4x32xf32, #tpu.memory_space<vmem>>, %arg7: memref<4x1xf32, #tpu.memory_space<vmem>>) attributes {dimension_semantics = [#tpu.dimension_semantics<parallel>, #tpu.dimension_semantics<arbitrary>], iteration_bounds = array<i64: 1, 1>, scalar_prefetch = 0 : i64, scratch_operands = 2 : i64, tpu.core_type = #tpu.core_type<tc>, window_params = [{transform_indices = @transform_0, window_bounds = array<i64: 1, 256>}, {transform_indices = @transform_1, window_bounds = array<i64: 256, 32>}, {transform_indices = @transform_2, window_bounds = array<i64: 1, 4, 32>}, {transform_indices = @transform_3, window_bounds = array<i64: 1, 4, 1>}]} {
    %c0_i32 = arith.constant 0 : i32
    %0 = arith.cmpi eq, %arg1, %c0_i32 : i32
    %1 = arith.extui %0 : i1 to i32
    %c0_i32_0 = arith.constant 0 : i32
    %2 = arith.cmpi ne, %1, %c0_i32_0 : i32
    scf.if %2 {
      %cst_28 = arith.constant 0.000000e+00 : f32
      %39 = vector.broadcast %cst_28 : f32 to vector<4x32xf32>
      %c0_29 = arith.constant 0 : index
      %c0_30 = arith.constant 0 : index
      %40 = vector.load %arg6[%c0_29, %c0_30] : memref<4x32xf32, #tpu.memory_space<vmem>>, vector<4x32xf32>
      tpu.vector_store %arg6[%c0_29, %c0_30], %39 {strides = array<i32>} : memref<4x32xf32, #tpu.memory_space<vmem>>, vector<4x32xf32>,
      %cst_31 = arith.constant 0.000000e+00 : f32
      %41 = vector.broadcast %cst_31 : f32 to vector<4x1xf32>
      %c0_32 = arith.constant 0 : index
      %c0_33 = arith.constant 0 : index
      %42 = vector.load %arg7[%c0_32, %c0_33] : memref<4x1xf32, #tpu.memory_space<vmem>>, vector<4x1xf32>
      tpu.vector_store %arg7[%c0_32, %c0_33], %41 {strides = array<i32>} : memref<4x1xf32, #tpu.memory_space<vmem>>, vector<4x1xf32>,
    } else {
    }
    %3 = tpu.iota {dimensions = array<i32: 0>} : vector<4x1xi32>
    %c0 = arith.constant 0 : index
    %c0_1 = arith.constant 0 : index
    %4 = vector.load %arg2[%c0, %c0_1] : memref<1x256xi32, #tpu.memory_space<vmem>>, vector<1x128xi32>
    %c0_2 = arith.constant 0 : index
    %c0_3 = arith.constant 0 : index
    %5 = vector.load %arg3[%c0_2, %c0_3] : memref<256x32xf32, #tpu.memory_space<vmem>>, vector<128x32xf32>
    %6 = vector.broadcast %3 : vector<4x1xi32> to vector<4x128xi32>
    %7 = vector.broadcast %4 : vector<1x128xi32> to vector<4x128xi32>
    %8 = arith.cmpi eq, %6, %7 : vector<4x128xi32>
    %9 = arith.extui %8 : vector<4x128xi1> to vector<4x128xi32>
    %10 = arith.sitofp %9 : vector<4x128xi32> to vector<4x128xf32>
    %c0_4 = arith.constant 0 : index
    %c0_5 = arith.constant 0 : index
    %11 = vector.load %arg6[%c0_4, %c0_5] : memref<4x32xf32, #tpu.memory_space<vmem>>, vector<4x32xf32>
    %cst = arith.constant dense<0.000000e+00> : vector<4x32xf32>
    %12 = tpu.matmul %10, %5, %cst {dimension_numbers = #tpu.dot_dimension_numbers<[1], [0], [0], [1], [0, 0, 1, 1], [], []>} : vector<4x128xf32>, vector<128x32xf32>, vector<4x32xf32> -> vector<4x32xf32>
    %13 = arith.addf %11, %12 : vector<4x32xf32>
    %c0_6 = arith.constant 0 : index
    %c0_7 = arith.constant 0 : index
    %14 = vector.load %arg6[%c0_6, %c0_7] : memref<4x32xf32, #tpu.memory_space<vmem>>, vector<4x32xf32>
    tpu.vector_store %arg6[%c0_6, %c0_7], %13 {strides = array<i32>} : memref<4x32xf32, #tpu.memory_space<vmem>>, vector<4x32xf32>,
    %c0_8 = arith.constant 0 : index
    %c0_9 = arith.constant 0 : index
    %15 = vector.load %arg7[%c0_8, %c0_9] : memref<4x1xf32, #tpu.memory_space<vmem>>, vector<4x1xf32>
    %cst_10 = arith.constant dense<0.000000e+00> : vector<4xf32>
    %16 = vector.multi_reduction <add>, %10, %cst_10 [1] : vector<4x128xf32> to vector<4xf32>
    %17 = vector.shape_cast %16 : vector<4xf32> to vector<4x1xf32>
    %18 = arith.addf %15, %17 : vector<4x1xf32>
    %c0_11 = arith.constant 0 : index
    %c0_12 = arith.constant 0 : index
    %19 = vector.load %arg7[%c0_11, %c0_12] : memref<4x1xf32, #tpu.memory_space<vmem>>, vector<4x1xf32>
    tpu.vector_store %arg7[%c0_11, %c0_12], %18 {strides = array<i32>} : memref<4x1xf32, #tpu.memory_space<vmem>>, vector<4x1xf32>,
    %c0_13 = arith.constant 0 : index
    %c128 = arith.constant 128 : index
    %20 = vector.load %arg2[%c0_13, %c128] : memref<1x256xi32, #tpu.memory_space<vmem>>, vector<1x128xi32>
    %c128_14 = arith.constant 128 : index
    %c0_15 = arith.constant 0 : index
    %21 = vector.load %arg3[%c128_14, %c0_15] : memref<256x32xf32, #tpu.memory_space<vmem>>, vector<128x32xf32>
    %22 = vector.broadcast %3 : vector<4x1xi32> to vector<4x128xi32>
    %23 = vector.broadcast %20 : vector<1x128xi32> to vector<4x128xi32>
    %24 = arith.cmpi eq, %22, %23 : vector<4x128xi32>
    %25 = arith.extui %24 : vector<4x128xi1> to vector<4x128xi32>
    %26 = arith.sitofp %25 : vector<4x128xi32> to vector<4x128xf32>
    %c0_16 = arith.constant 0 : index
    %c0_17 = arith.constant 0 : index
    %27 = vector.load %arg6[%c0_16, %c0_17] : memref<4x32xf32, #tpu.memory_space<vmem>>, vector<4x32xf32>
    %cst_18 = arith.constant dense<0.000000e+00> : vector<4x32xf32>
    %28 = tpu.matmul %26, %21, %cst_18 {dimension_numbers = #tpu.dot_dimension_numbers<[1], [0], [0], [1], [0, 0, 1, 1], [], []>} : vector<4x128xf32>, vector<128x32xf32>, vector<4x32xf32> -> vector<4x32xf32>
    %29 = arith.addf %27, %28 : vector<4x32xf32>
    %c0_19 = arith.constant 0 : index
    %c0_20 = arith.constant 0 : index
    %30 = vector.load %arg6[%c0_19, %c0_20] : memref<4x32xf32, #tpu.memory_space<vmem>>, vector<4x32xf32>
    tpu.vector_store %arg6[%c0_19, %c0_20], %29 {strides = array<i32>} : memref<4x32xf32, #tpu.memory_space<vmem>>, vector<4x32xf32>,
    %c0_21 = arith.constant 0 : index
    %c0_22 = arith.constant 0 : index
    %31 = vector.load %arg7[%c0_21, %c0_22] : memref<4x1xf32, #tpu.memory_space<vmem>>, vector<4x1xf32>
    %cst_23 = arith.constant dense<0.000000e+00> : vector<4xf32>
    %32 = vector.multi_reduction <add>, %26, %cst_23 [1] : vector<4x128xf32> to vector<4xf32>
    %33 = vector.shape_cast %32 : vector<4xf32> to vector<4x1xf32>
    %34 = arith.addf %31, %33 : vector<4x1xf32>
    %c0_24 = arith.constant 0 : index
    %c0_25 = arith.constant 0 : index
    %35 = vector.load %arg7[%c0_24, %c0_25] : memref<4x1xf32, #tpu.memory_space<vmem>>, vector<4x1xf32>
    tpu.vector_store %arg7[%c0_24, %c0_25], %34 {strides = array<i32>} : memref<4x1xf32, #tpu.memory_space<vmem>>, vector<4x1xf32>,
    %c0_i32_26 = arith.constant 0 : i32
    %36 = arith.cmpi eq, %arg1, %c0_i32_26 : i32
    %37 = arith.extui %36 : i1 to i32
    %c0_i32_27 = arith.constant 0 : i32
    %38 = arith.cmpi ne, %37, %c0_i32_27 : i32
    scf.if %38 {
      %c0_28 = arith.constant 0 : index
      %c0_29 = arith.constant 0 : index
      %39 = vector.load %arg6[%c0_28, %c0_29] : memref<4x32xf32, #tpu.memory_space<vmem>>, vector<4x32xf32>
      %c0_30 = arith.constant 0 : index
      %c0_31 = arith.constant 0 : index
      %c0_32 = arith.constant 0 : index
      %40 = vector.load %arg4[%c0_30, %c0_31, %c0_32] : memref<1x4x32xf32, #tpu.memory_space<vmem>>, vector<1x4x32xf32>
      %41 = vector.shape_cast %40 : vector<1x4x32xf32> to vector<4x32xf32>
      %42 = vector.shape_cast %39 : vector<4x32xf32> to vector<1x4x32xf32>
      tpu.vector_store %arg4[%c0_30, %c0_31, %c0_32], %42 {strides = array<i32>} : memref<1x4x32xf32, #tpu.memory_space<vmem>>, vector<1x4x32xf32>,
      %c0_33 = arith.constant 0 : index
      %c0_34 = arith.constant 0 : index
      %43 = vector.load %arg7[%c0_33, %c0_34] : memref<4x1xf32, #tpu.memory_space<vmem>>, vector<4x1xf32>
      %c0_35 = arith.constant 0 : index
      %c0_36 = arith.constant 0 : index
      %c0_37 = arith.constant 0 : index
      %44 = vector.load %arg5[%c0_35, %c0_36, %c0_37] : memref<1x4x1xf32, #tpu.memory_space<vmem>>, vector<1x4x1xf32>
      %45 = vector.shape_cast %44 : vector<1x4x1xf32> to vector<4x1xf32>
      %46 = vector.shape_cast %43 : vector<4x1xf32> to vector<1x4x1xf32>
      tpu.vector_store %arg5[%c0_35, %c0_36, %c0_37], %46 {strides = array<i32>} : memref<1x4x1xf32, #tpu.memory_space<vmem>>, vector<1x4x1xf32>,
    } else {
    }
    return
  }
  func.func @transform_0(%arg0: i32, %arg1: i32) -> (i32, i32) {
    %c1_i32 = arith.constant 1 : i32
    %0 = arith.muli %arg0, %c1_i32 : i32
    %1 = arith.addi %0, %arg1 : i32
    %c0_i32 = arith.constant 0 : i32
    %c0_i32_0 = arith.constant 0 : i32
    return %c0_i32, %1 : i32, i32
  }
  func.func @transform_1(%arg0: i32, %arg1: i32) -> (i32, i32) {
    %c1_i32 = arith.constant 1 : i32
    %0 = arith.muli %arg0, %c1_i32 : i32
    %1 = arith.addi %0, %arg1 : i32
    %c0_i32 = arith.constant 0 : i32
    %c0_i32_0 = arith.constant 0 : i32
    return %1, %c0_i32 : i32, i32
  }
  func.func @transform_2(%arg0: i32, %arg1: i32) -> (i32, i32, i32) {
    %c0_i32 = arith.constant 0 : i32
    %c0_i32_0 = arith.constant 0 : i32
    %c0_i32_1 = arith.constant 0 : i32
    return %arg0, %c0_i32, %c0_i32_0 : i32, i32, i32
  }
  func.func @transform_3(%arg0: i32, %arg1: i32) -> (i32, i32, i32) {
    %c0_i32 = arith.constant 0 : i32
    %c0_i32_0 = arith.constant 0 : i32
    %c0_i32_1 = arith.constant 0 : i32
    return %arg0, %c0_i32, %c0_i32_0 : i32, i32, i32
  }
}

</mosaic_0001>

<bundles_post_ra>
// kernel: tpu_custom_call.1
= control target key start
LH: loop header
LB: loop body
LE: loop exit
PB: predicated region body
PF: predicated region fallthrough
CT: control target
= control target key end

     0   :  { %v444_v1 = vmov 0.0   ;;  %vm59_vm0 = vcmask 257024   ;;  %s624_s0 = inlined_call_operand.vmem [shape: s32[1,256], index: 0, kind: input, shape index: {}]   ;;  %s625_s1 = inlined_call_operand.vmem [shape: f32[256,32], index: 1, kind: input, shape index: {}]   ;;  %s626_s2 = inlined_call_operand.hbm [shape: f32[1,4,32], index: 2, kind: output, shape index: {0}]   ;;  %s627_s3 = inlined_call_operand.vmem [shape: f32[1,4,1], index: 3, kind: output, shape index: {1}]  }
   0x1   :  { %v81_v0 = vld [vmem:[%s625_s1 + $0x78] sm:$0xff]  ;;  %348 = vmatprep.subr.mxu0 %v444_v1  ;;  %v80_v2 = vld [vmem:[%s625_s1 + $0x70] sm:$0xff]  ;;  %383 = vmatprep.subr.mxu1 %v444_v1  ;;  %60 = vst.msk [vmem:[#allocation2] sm:$0xf] %vm59_vm0, %v444_v1  ;;  %v79_v5 = vld [vmem:[%s625_s1 + $0x68] sm:$0xff] }
   0x2   :  { %v187_v3 = vld [vmem:[%s625_s1 + $0xf8] sm:$0xff]  ;;  %349 = vmatpush3.msra.mxu0 %v81_v0  ;;  %v186_v4 = vld [vmem:[%s625_s1 + $0xf0] sm:$0xff]  ;;  %v185_v6 = vld [vmem:[%s625_s1 + $0xe8] sm:$0xff] }
   0x3   :  { %384 = vmatpush3.msra.mxu1 %v187_v3  ;;  %350 = vmatprep.subr.mxu0 %v444_v1  ;;  %v78_v7 = vld [vmem:[%s625_s1 + $0x60] sm:$0xff]  ;;  %v77_v9 = vld [vmem:[%s625_s1 + $0x58] sm:$0xff]  ;;  %v76_v11 = vld [vmem:[%s625_s1 + $0x50] sm:$0xff] }
   0x4   :  { %385 = vmatprep.subr.mxu1 %v444_v1  ;;  %351 = vmatpush3.msra.mxu0 %v80_v2  ;;  %v184_v8 = vld [vmem:[%s625_s1 + $0xe0] sm:$0xff]  ;;  %v183_v10 = vld [vmem:[%s625_s1 + $0xd8] sm:$0xff]  ;;  %v182_v12 = vld [vmem:[%s625_s1 + $0xd0] sm:$0xff] }
   0x5   :  { %386 = vmatpush3.msra.mxu1 %v186_v4  ;;  %352 = vmatprep.subr.mxu0 %v444_v1  ;;  %v75_v13 = vld [vmem:[%s625_s1 + $0x48] sm:$0xff] }
   0x6   :  { %387 = vmatprep.subr.mxu1 %v444_v1  ;;  %353 = vmatpush3.msra.mxu0 %v79_v5  ;;  %v181_v14 = vld [vmem:[%s625_s1 + $0xc8] sm:$0xff] }
   0x7   :  { %388 = vmatpush3.msra.mxu1 %v185_v6  ;;  %354 = vmatprep.subr.mxu0 %v444_v1 }
   0x8   :  { %389 = vmatprep.subr.mxu1 %v444_v1  ;;  %355 = vmatpush3.msra.mxu0 %v78_v7 }
   0x9   :  { %390 = vmatpush3.msra.mxu1 %v184_v8  ;;  %356 = vmatprep.subr.mxu0 %v444_v1 }
   0xa   :  { %391 = vmatprep.subr.mxu1 %v444_v1  ;;  %357 = vmatpush3.msra.mxu0 %v77_v9 }
   0xb   :  { %392 = vmatpush3.msra.mxu1 %v183_v10  ;;  %358 = vmatprep.subr.mxu0 %v444_v1 }
   0xc   :  { %393 = vmatprep.subr.mxu1 %v444_v1  ;;  %359 = vmatpush3.msra.mxu0 %v76_v11 }
   0xd   :  { %394 = vmatpush3.msra.mxu1 %v182_v12 }
   0xe   :  { %9 = vsyncpa [#allocation5], 0  ;;  %360 = vmatprep.subr.mxu0 %v444_v1  ;;  %v74_v15 = vld [vmem:[%s625_s1 + $0x40] sm:$0xff]  ;;  %395 = vmatprep.subr.mxu1 %v444_v1  ;;  %v73_v17 = vld [vmem:[%s625_s1 + $0x38] sm:$0xff]  ;;  %v63_v23 = vlaneseq  ;;  %vm445_vm1 = vmmov 0   ;;  %vm164_vm3 = vcmask 1043456  }
   0xf   :  { %v180_v16 = vld [vmem:[%s625_s1 + $0xc0] sm:$0xff]  ;;  %361 = vmatpush3.msra.mxu0 %v75_v13  ;;  %396 = vmatpush3.msra.mxu1 %v181_v14  ;;  %v179_v18 = vld [vmem:[%s625_s1 + $0xb8] sm:$0xff]  ;;  %v72_v19 = vld [vmem:[%s625_s1 + $0x30] sm:$0xff]  ;;  %v446_v40 = vmov 1.0   ;;  %vm61_vm5 = vcmask 3072   ;;  %s447_s26 = smov [#allocation4]  }
  0x10   :  { %362 = vmatprep.subr.mxu0 %v444_v1  ;;  %397 = vmatprep.subr.mxu1 %v444_v1  ;;  %v178_v20 = vld [vmem:[%s625_s1 + $0xb0] sm:$0xff]  ;;  %v71_v21 = vld [vmem:[%s625_s1 + $0x28] sm:$0xff]  ;;  %v70_v24 = vld [vmem:[%s625_s1 + $0x20] sm:$0xff]  ;;  %v64_v27 = vshrl.u32 %v63_v23, 7  ;;  %62 = vst.msk [vmem:[#allocation3] sm:$0xf] %vm61_vm5, %v444_v1 }
  0x11   :  { %363 = vmatpush3.msra.mxu0 %v74_v15  ;;  %398 = vmatpush3.msra.mxu1 %v180_v16  ;;  %v177_v22 = vld [vmem:[%s625_s1 + $0xa8] sm:$0xff]  ;;  %v176_v25 = vld [vmem:[%s625_s1 + $0xa0] sm:$0xff]  ;;  %v69_v26 = vld [vmem:[%s625_s1 + $0x18] sm:$0xff]  ;;  %s287_s27 = sshll.u32 %s447_s26, 4  ;;  %s288_s27 = int_to_ptr.vmem [resolvable:$true] %s287_s27 }
  0x12   :  { %364 = vmatprep.subr.mxu0 %v444_v1  ;;  %399 = vmatprep.subr.mxu1 %v444_v1  ;;  %v308_v28 = vld [vmem:[%s624_s0] ss:$0 sm:$0xff]  ;;  %v175_v29 = vld [vmem:[%s625_s1 + $0x98] sm:$0xff]  ;;  %v68_v30 = vld [vmem:[%s625_s1 + $0x10] sm:$0xff]  ;;  %s422_s28 = scalar_lea.vmem %s288_s27, 64  ;;  %p427_p1 = scmp.lt.s32.totalorder %s288_s27, %s288_s27 }
  0x13   :  { %365 = vmatpush3.msra.mxu0 %v73_v17  ;;  %400 = vmatpush3.msra.mxu1 %v179_v18  ;;  %v174_v31 = vld [vmem:[%s625_s1 + $0x90] sm:$0xff]  ;;  %v67_v32 = vld [vmem:[%s625_s1 + $0x8] sm:$0xff]  ;;  %vm86_vm2 = vcmp.eq.s32.totalorder %v64_v27, %v308_v28  ;;  %v311_v34 = vld [vmem:[%s624_s0 + $0x1] ss:$0 sm:$0xff]  ;;  %p423_p0 = scmp.ne.s32.totalorder %s288_s27, %s422_s28  ;;  %p428_p2 = scmp.lt.s32.totalorder %s422_s28, %s422_s28 }
  0x14   :  { %366 = vmatprep.subr.mxu0 %v444_v1  ;;  %401 = vmatprep.subr.mxu1 %v444_v1  ;;  %v173_v33 = vld [vmem:[%s625_s1 + $0x88] sm:$0xff]  ;;  %v309_v35 = vsel %vm86_vm2, 1.0, %v444_v1  ;;  %v66_v36 = vld [vmem:[%s625_s1] sm:$0xff]  ;;  %vm192_vm4 = vcmp.eq.s32.totalorder %v64_v27, %v311_v34 }
  0x15   :  { %367 = vmatpush3.msra.mxu0 %v72_v19  ;;  %402 = vmatpush3.msra.mxu1 %v178_v20  ;;  %v172_v37 = vld [vmem:[%s625_s1 + $0x80] sm:$0xff]  ;;  %v165_v38 = vsel %vm164_vm3, %v309_v35, 0.0  ;;  %v312_v39 = vsel %vm192_vm4, 1.0, %v444_v1  ;;  %p429_p3 = por %p428_p2, %p427_p1 }
  0x16   :  { %368 = vmatprep.subr.mxu0 %v444_v1  ;;  %403 = vmatprep.subr.mxu1 %v444_v1  ;;  %v269_v41 = vsel %vm164_vm3, %v312_v39, 0.0  ;;  %v89_v49 = vld [vmem:[#allocation2] sm:$0xf] }
  0x17   :  { %369 = vmatpush3.msra.mxu0 %v71_v21  ;;  %404 = vmatpush3.msra.mxu1 %v177_v22  ;;  %v163_v42 = vld [vmem:[#allocation3] sm:$0xf]  ;;  %p430_p4 = pnand %p429_p3, %p423_p0 }
  0x18   :  { %370 = vmatprep.subr.mxu0 %v444_v1  ;;  %405 = vmatprep.subr.mxu1 %v444_v1 }
  0x19   :  { %371 = vmatpush3.msra.mxu0 %v70_v24  ;;  %380 = vmatprep.mubr.msk.f32.mxu0 %vm445_vm1, %v444_v1 }
  0x1a   :  { %372 = vmatprep.subr.mxu0 %v444_v1  ;;  %406 = vmatpush3.msra.mxu1 %v176_v25 }
  0x1b   :  { %373 = vmatpush3.msra.mxu0 %v69_v26  ;;  %407 = vmatprep.subr.mxu1 %v444_v1 }
  0x1c   :  { %374 = vmatprep.subr.mxu0 %v444_v1  ;;  %408 = vmatpush3.msra.mxu1 %v175_v29 }
  0x1d   :  { %375 = vmatpush3.msra.mxu0 %v68_v30  ;;  %409 = vmatprep.subr.mxu1 %v444_v1 }
  0x1e   :  { %376 = vmatprep.subr.mxu0 %v444_v1  ;;  %410 = vmatpush3.msra.mxu1 %v174_v31 }
  0x1f   :  { %377 = vmatpush3.msra.mxu0 %v67_v32  ;;  %411 = vmatprep.subr.mxu1 %v444_v1 }
  0x20   :  { %378 = vmatprep.subr.mxu0 %v444_v1  ;;  %412 = vmatpush3.msra.mxu1 %v173_v33 }
  0x21   :  { %379 = vmatpush3.msra.mxu0 %v66_v36  ;;  %413 = vmatprep.subr.mxu1 %v444_v1 }
  0x22   :  { %381 = vmatmul.mubr.msk.f32.vlgmr.msra.gmra.mxu0 %vm86_vm2, %v446_v40  ;;  %414 = vmatpush3.msra.mxu1 %v172_v37 }
  0x23   :  { %415 = vmatprep.mubr.msk.f32.mxu1 %vm445_vm1, %v444_v1  ;;  %166 = vadd.xlane.f32.xlu0 %v165_v38 }
  0x24   :  { %416 = vmatmul.mubr.msk.f32.vlgmr.msra.gmra.mxu1 %vm192_vm4, %v446_v40 }
  0x27   :  { %270 = vadd.xlane.f32.xlu0 %v269_v41 }
  0xac   :  { %v167_v43 = vpop.xlane.xlu0 %166 }
  0xad   :  { %v168_v44 = vadd.f32 %v167_v43, %v163_v42 }
  0xaf   :  { %170 = vst.msk [vmem:[#allocation3] sm:$0xf] %vm61_vm5, %v168_v44 }
  0xb0   :  { %v271_v45 = vpop.xlane.xlu0 %270 }
  0xb6   :  { %v268_v46 = vld [vmem:[#allocation3] sm:$0xf] }
  0xb7   :  { %v272_v47 = vadd.f32 %v271_v45, %v268_v46 }
  0xb9   :  { %273 = vst.msk [vmem:[#allocation3] sm:$0xf] %vm61_vm5, %v272_v47 }
  0xc0   :  { %v279_v48 = vld [vmem:[#allocation3] sm:$0xf] }
  0xc1   :  { %280 = vst.msk [vmem:[%s627_s3] sm:$0xf] %vm61_vm5, %v279_v48 }
  0xe2   :  { %v156_v50 = vpop.f32.mrf.mxu0 }
  0xe3   :  { %v160_v51 = vadd.f32 %v156_v50, %v89_v49 }
  0xe4   :  { %v382_v52 = vpop.f32.mrf.mxu0  ;;  %v262_v53 = vpop.f32.mrf.mxu1 }
  0xe5   :  { %162 = vst.msk [vmem:[#allocation2] sm:$0xf] %vm59_vm0, %v160_v51 }
  0xe6   :  { %v417_v54 = vpop.f32.mrf.mxu1 }
  0xec   :  { %v195_v55 = vld [vmem:[#allocation2] sm:$0xf] }
  0xed   :  { %v266_v56 = vadd.f32 %v262_v53, %v195_v55 }
  0xef   :  { %267 = vst.msk [vmem:[#allocation2] sm:$0xf] %vm59_vm0, %v266_v56 }
  0xf6   :  { %v277_v57 = vld [vmem:[#allocation2] sm:$0xf] }
  0xf7   :  { %278 = vst.msk [vmem:[#allocation4] sm:$0xf] %vm59_vm0, %v277_v57 }
  0xf8   :  { %433 = shalt.err (!%p430_p4)
}
  0xf9   :  { %290 = dma.vmem_to_hbm [thread:$0]  %s288_s27, 64, %s626_s2, [#allocation5]  }
  0xfa   :  { %442 = dma.done.wait [#allocation5], 64  }
  0xfb   :  { %443 = vsyncadd [#allocation5], 4294967232 }
  0xfc   :  { %298 = vsyncpa [#allocation5], 1 }

</bundles_post_ra>
